<compile_context>
chip_gen: v6e
topology: v6e:2x2x1
jax: 0.10.0
libtpu: 0.0.40
codegen_flags: <defaults>
</compile_context>

<pallas_src>
import functools

import jax
import jax.numpy as jnp
from jax.experimental import pallas as pl
from jax.experimental.pallas import tpu as pltpu


def _maml_patch_kernel(sx_ref, sxt_ref, sy_ref, qx_ref, qy_ref,
                       w1_ref, b1_ref, w2r_ref, b2_ref, out_ref,
                       *, inner_lr, adapt_steps):
    sx = sx_ref[...]      # (TB, Ns, D)
    sxt = sxt_ref[...]    # (TB, D, Ns)   same data, host-transposed
    sy = sy_ref[...]      # (TB, Ns, 1)
    qx = qx_ref[...]      # (TB, Nq, D)
    qy = qy_ref[...]      # (TB, Nq, 1)

    tb, ns, d = sx.shape
    nq = qx.shape[1]
    h = w1_ref.shape[1]
    inv_ns = 1.0 / ns
    inv_nq = 1.0 / nq

    # Per-task copies of the meta-parameters (broadcast once, outside the loop).
    w1 = jnp.broadcast_to(w1_ref[...][None], (tb, d, h))
    b1 = jnp.broadcast_to(b1_ref[...][None], (tb, 1, h))
    w2 = jnp.broadcast_to(w2r_ref[...][None], (tb, 1, h))   # row form of W2 (== W2.T)
    b2 = jnp.broadcast_to(b2_ref[...][None], (tb, 1, 1))

    def inner_step(_, params):
        w1c, b1c, w2c, b2c = params
        # --- forward on the support set ---
        a1 = jnp.einsum("tnd,tdh->tnh", sx, w1c,
                        preferred_element_type=jnp.float32) + b1c         # (TB,Ns,H) MXU
        z = jax.nn.sigmoid(a1)
        logits = jnp.sum(z * w2c, axis=-1, keepdims=True) + b2c           # (TB,Ns,1) VPU/XLU
        # --- analytic grads of mean BCE-with-logits ---
        dlog = (jax.nn.sigmoid(logits) - sy) * inv_ns                     # (TB,Ns,1)
        dw2 = jnp.sum(z * dlog, axis=1, keepdims=True)                    # (TB,1,H) row form
        db2 = jnp.sum(dlog, axis=1, keepdims=True)                        # (TB,1,1)
        dz = dlog * w2c                                                   # (TB,Ns,H) broadcast outer product
        da1 = dz * z * (1.0 - z)                                          # (TB,Ns,H)
        dw1 = jnp.einsum("tdn,tnh->tdh", sxt, da1,
                         preferred_element_type=jnp.float32)              # (TB,D,H) MXU
        db1 = jnp.sum(da1, axis=1, keepdims=True)                         # (TB,1,H)
        # --- SGD step (value-identical to higher's differentiable inner step) ---
        return (w1c - inner_lr * dw1, b1c - inner_lr * db1,
                w2c - inner_lr * dw2, b2c - inner_lr * db2)

    params = (w1, b1, w2, b2)
    if adapt_steps <= 4:
        for _ in range(adapt_steps):                 # small static unroll
            params = inner_step(0, params)
    else:                                            # keep vreg pressure flat
        params = jax.lax.fori_loop(0, adapt_steps, inner_step, params)
    w1, b1, w2, b2 = params

    # --- query loss with adapted parameters ---
    a1q = jnp.einsum("tnd,tdh->tnh", qx, w1,
                     preferred_element_type=jnp.float32) + b1             # (TB,Nq,H)
    zq = jax.nn.sigmoid(a1q)
    lq = jnp.sum(zq * w2, axis=-1, keepdims=True) + b2                    # (TB,Nq,1)

    bce = jnp.maximum(lq, 0.0) - lq * qy + jnp.log1p(jnp.exp(-jnp.abs(lq)))
    loss = jnp.sum(bce, axis=1, keepdims=True) * inv_nq                   # (TB,1,1)

    # Scatter TB per-task scalars into one lane-dense row (1, 1, TB) without a
    # relayouting reshape: diagonal select + reduce over the task axis.
    task_id = jax.lax.broadcasted_iota(jnp.int32, (tb, 1, tb), 0)
    lane_id = jax.lax.broadcasted_iota(jnp.int32, (tb, 1, tb), 2)
    loss_b = jnp.broadcast_to(loss, (tb, 1, tb))
    out_ref[...] = jnp.sum(jnp.where(task_id == lane_id, loss_b, 0.0),
                           axis=0, keepdims=True)


def maml_patch_forward_batched(support_x, support_y, query_x, query_y,
                               w1, b1, w2, b2, *,
                               inner_lr=0.05, adapt_steps=1, task_block=None):
    """Per-task MAMLPatch query losses for a meta-batch of T tasks.

    support_x: (T, Ns, D), support_y: (T, Ns) or (T, Ns, 1)
    query_x:   (T, Nq, D), query_y:   (T, Nq) or (T, Nq, 1)
    w1: (D, H)  b1: (1, H)  w2: (H, 1)  b2: (1, 1)
    Returns (T,) float32 query losses.
    """
    t, ns, d = support_x.shape
    nq = query_x.shape[1]
    h = w1.shape[1]

    if task_block is None:
        # ~few KB per task in f32; sized conservatively for v7x's 64 MiB VMEM.
        task_block = min(t, 512)
    assert t % task_block == 0, "number of tasks must be divisible by task_block"
    nb = t // task_block
    tbk = task_block

    sx = support_x.astype(jnp.float32)
    sxt = jnp.swapaxes(sx, 1, 2)                             # (T, D, Ns) host-side
    sy = support_y.astype(jnp.float32).reshape(t, ns, 1)
    qx = query_x.astype(jnp.float32)
    qy = query_y.astype(jnp.float32).reshape(t, nq, 1)
    w1f = w1.astype(jnp.float32)
    b1f = b1.astype(jnp.float32).reshape(1, h)
    w2_row = w2.astype(jnp.float32).reshape(1, h)            # W2 transposed once, host side
    b2f = b2.astype(jnp.float32).reshape(1, 1)

    kernel = functools.partial(_maml_patch_kernel,
                               inner_lr=float(inner_lr),
                               adapt_steps=int(adapt_steps))

    grid_spec = pltpu.PrefetchScalarGridSpec(
        num_scalar_prefetch=0,
        grid=(nb,),
        in_specs=[
            pl.BlockSpec((tbk, ns, d), lambda i: (i, 0, 0)),   # support_x
            pl.BlockSpec((tbk, d, ns), lambda i: (i, 0, 0)),   # support_x^T
            pl.BlockSpec((tbk, ns, 1), lambda i: (i, 0, 0)),   # support_y
            pl.BlockSpec((tbk, nq, d), lambda i: (i, 0, 0)),   # query_x
            pl.BlockSpec((tbk, nq, 1), lambda i: (i, 0, 0)),   # query_y
            pl.BlockSpec((d, h), lambda i: (0, 0)),            # W1 (shared, fetched once)
            pl.BlockSpec((1, h), lambda i: (0, 0)),            # b1
            pl.BlockSpec((1, h), lambda i: (0, 0)),            # W2 row form
            pl.BlockSpec((1, 1), lambda i: (0, 0)),            # b2
        ],
        out_specs=pl.BlockSpec((1, 1, tbk), lambda i: (i, 0, 0)),
    )

    losses = pl.pallas_call(
        kernel,
        out_shape=jax.ShapeDtypeStruct((nb, 1, tbk), jnp.float32),
        grid_spec=grid_spec,
        compiler_params=pltpu.CompilerParams(
            dimension_semantics=("parallel",)),   # 2 TCs on v7x; free on v5e/v6e
    )(sx, sxt, sy, qx, qy, w1f, b1f, w2_row, b2f)
    return losses.reshape(t)


def maml_patch_forward(support_x, support_y, query_x, query_y,
                       w1, b1, w2, b2, *, inner_lr=0.05, adapt_steps=1):
    """Original MAMLPatch.forward interface: one task -> scalar query loss."""
    losses = maml_patch_forward_batched(
        support_x[None], support_y[None], query_x[None], query_y[None],
        w1, b1, w2, b2, inner_lr=inner_lr, adapt_steps=adapt_steps, task_block=1)
    return losses[0]


def _reference_losses(support_x, support_y, query_x, query_y, w1, b1, w2, b2,
                      inner_lr, adapt_steps):
    """Pure-JAX per-task reference (same math, standard matmul formulation)."""
    t, ns, _ = support_x.shape
    nq = query_x.shape[1]
    sy = support_y.reshape(t, ns, 1).astype(jnp.float32)
    qy = query_y.reshape(t, nq, 1).astype(jnp.float32)

    def one_task(sx, syt, qx, qyt):
        w1c, b1c, w2c, b2c = w1, b1, w2, b2
        for _ in range(adapt_steps):
            z = jax.nn.sigmoid(sx @ w1c + b1c)
            logits = z @ w2c + b2c
            dlog = (jax.nn.sigmoid(logits) - syt) / ns
            dw2 = z.T @ dlog
            db2 = jnp.sum(dlog, axis=0, keepdims=True)
            dz = dlog @ w2c.T
            da1 = dz * z * (1.0 - z)
            dw1 = sx.T @ da1
            db1 = jnp.sum(da1, axis=0, keepdims=True)
            w1c, b1c = w1c - inner_lr * dw1, b1c - inner_lr * db1
            w2c, b2c = w2c - inner_lr * dw2, b2c - inner_lr * db2
        zq = jax.nn.sigmoid(qx @ w1c + b1c)
        lq = zq @ w2c + b2c
        bce = jnp.maximum(lq, 0.0) - lq * qyt + jnp.log1p(jnp.exp(-jnp.abs(lq)))
        return jnp.mean(bce)

    return jax.vmap(one_task)(support_x.astype(jnp.float32), sy,
                              query_x.astype(jnp.float32), qy)


if __name__ == "__main__":
    key = jax.random.PRNGKey(0)
    ks = jax.random.split(key, 6)

    T, Ns, Nq, D, H = 8, 8, 8, 16, 32       # meta-batch of 8 tasks
    TB = 4                                  # tasks per grid step -> grid=(2,)

    support_x = jax.random.normal(ks[0], (T, Ns, D), dtype=jnp.float32)
    support_y = jax.random.bernoulli(ks[1], 0.5, (T, Ns)).astype(jnp.float32)
    query_x = jax.random.normal(ks[2], (T, Nq, D), dtype=jnp.float32)
    query_y = jax.random.bernoulli(ks[3], 0.5, (T, Nq)).astype(jnp.float32)

    # deterministic LogicBottleneck parameter init
    w1 = jax.random.normal(ks[4], (D, H), dtype=jnp.float32) * (1.0 / jnp.sqrt(D))
    b1 = jnp.zeros((1, H), dtype=jnp.float32)
    w2 = jax.random.normal(ks[5], (H, 1), dtype=jnp.float32) * (1.0 / jnp.sqrt(H))
    b2 = jnp.zeros((1, 1), dtype=jnp.float32)

    # batched kernel over the whole meta-batch
    losses = maml_patch_forward_batched(
        support_x, support_y, query_x, query_y, w1, b1, w2, b2,
        inner_lr=0.05, adapt_steps=1, task_block=TB)
    losses = jax.block_until_ready(losses)

    # correctness spot-check against a pure-JAX reference
    with jax.default_matmul_precision("highest"):
        ref = _reference_losses(support_x, support_y, query_x, query_y,
                                w1, b1, w2, b2, 0.05, 1)
    ref = jax.block_until_ready(ref)
    max_err = float(jnp.max(jnp.abs(losses - ref)))
    assert max_err < 5e-3, f"kernel/reference mismatch: max_err={max_err}"

    # original per-task MAMLPatch.forward interface (single task -> scalar loss)
    loss0 = maml_patch_forward(support_x[0], support_y[0][:, None],
                               query_x[0], query_y[0][:, None],
                               w1, b1, w2, b2, inner_lr=0.05, adapt_steps=1)
    jax.block_until_ready(loss0)

    print("KERNEL_OK")
</pallas_src>

<mosaic_0001>
module attributes {stable_mosaic.version = 11 : i64} {
  func.func @_maml_patch_kernel(%arg0: i32, %arg1: memref<4x8x16xf32, #tpu.memory_space<vmem>>, %arg2: memref<4x16x8xf32, #tpu.memory_space<vmem>>, %arg3: memref<4x8x1xf32, #tpu.memory_space<vmem>>, %arg4: memref<4x8x16xf32, #tpu.memory_space<vmem>>, %arg5: memref<4x8x1xf32, #tpu.memory_space<vmem>>, %arg6: memref<16x32xf32, #tpu.memory_space<vmem>>, %arg7: memref<1x32xf32, #tpu.memory_space<vmem>>, %arg8: memref<1x32xf32, #tpu.memory_space<vmem>>, %arg9: memref<1x1xf32, #tpu.memory_space<vmem>>, %arg10: memref<1x1x4xf32, #tpu.memory_space<vmem>>) attributes {dimension_semantics = [#tpu.dimension_semantics<parallel>], iteration_bounds = array<i64: 2>, scalar_prefetch = 0 : i64, scratch_operands = 0 : i64, tpu.core_type = #tpu.core_type<tc>, window_params = [{transform_indices = @transform_0, window_bounds = array<i64: 4, 8, 16>}, {transform_indices = @transform_1, window_bounds = array<i64: 4, 16, 8>}, {transform_indices = @transform_2, window_bounds = array<i64: 4, 8, 1>}, {transform_indices = @transform_3, window_bounds = array<i64: 4, 8, 16>}, {transform_indices = @transform_4, window_bounds = array<i64: 4, 8, 1>}, {pipeline_mode = #tpu.pipeline_mode<synchronous>, transform_indices = @transform_5, window_bounds = array<i64: 16, 32>}, {pipeline_mode = #tpu.pipeline_mode<synchronous>, transform_indices = @transform_6, window_bounds = array<i64: 1, 32>}, {pipeline_mode = #tpu.pipeline_mode<synchronous>, transform_indices = @transform_7, window_bounds = array<i64: 1, 32>}, {pipeline_mode = #tpu.pipeline_mode<synchronous>, transform_indices = @transform_8, window_bounds = array<i64: 1, 1>}, {transform_indices = @transform_9, window_bounds = array<i64: 1, 1, 4>}]} {
    %c0 = arith.constant 0 : index
    %c0_0 = arith.constant 0 : index
    %c0_1 = arith.constant 0 : index
    %0 = vector.load %arg1[%c0, %c0_0, %c0_1] : memref<4x8x16xf32, #tpu.memory_space<vmem>>, vector<4x8x16xf32>
    %c0_2 = arith.constant 0 : index
    %c0_3 = arith.constant 0 : index
    %c0_4 = arith.constant 0 : index
    %1 = vector.load %arg2[%c0_2, %c0_3, %c0_4] : memref<4x16x8xf32, #tpu.memory_space<vmem>>, vector<4x16x8xf32>
    %c0_5 = arith.constant 0 : index
    %c0_6 = arith.constant 0 : index
    %c0_7 = arith.constant 0 : index
    %2 = vector.load %arg3[%c0_5, %c0_6, %c0_7] : memref<4x8x1xf32, #tpu.memory_space<vmem>>, vector<4x8x1xf32>
    %c0_8 = arith.constant 0 : index
    %c0_9 = arith.constant 0 : index
    %c0_10 = arith.constant 0 : index
    %3 = vector.load %arg4[%c0_8, %c0_9, %c0_10] : memref<4x8x16xf32, #tpu.memory_space<vmem>>, vector<4x8x16xf32>
    %c0_11 = arith.constant 0 : index
    %c0_12 = arith.constant 0 : index
    %c0_13 = arith.constant 0 : index
    %4 = vector.load %arg5[%c0_11, %c0_12, %c0_13] : memref<4x8x1xf32, #tpu.memory_space<vmem>>, vector<4x8x1xf32>
    %c0_14 = arith.constant 0 : index
    %c0_15 = arith.constant 0 : index
    %5 = vector.load %arg6[%c0_14, %c0_15] : memref<16x32xf32, #tpu.memory_space<vmem>>, vector<16x32xf32>
    %6 = vector.shape_cast %5 : vector<16x32xf32> to vector<1x16x32xf32>
    %7 = vector.shape_cast %6 : vector<1x16x32xf32> to vector<1x16x32xf32>
    %8 = vector.broadcast %7 : vector<1x16x32xf32> to vector<4x16x32xf32>
    %c0_16 = arith.constant 0 : index
    %c0_17 = arith.constant 0 : index
    %9 = vector.load %arg7[%c0_16, %c0_17] : memref<1x32xf32, #tpu.memory_space<vmem>>, vector<1x32xf32>
    %10 = vector.shape_cast %9 : vector<1x32xf32> to vector<1x1x32xf32>
    %11 = vector.shape_cast %10 : vector<1x1x32xf32> to vector<1x1x32xf32>
    %12 = vector.broadcast %11 : vector<1x1x32xf32> to vector<4x1x32xf32>
    %c0_18 = arith.constant 0 : index
    %c0_19 = arith.constant 0 : index
    %13 = vector.load %arg8[%c0_18, %c0_19] : memref<1x32xf32, #tpu.memory_space<vmem>>, vector<1x32xf32>
    %14 = vector.shape_cast %13 : vector<1x32xf32> to vector<1x1x32xf32>
    %15 = vector.shape_cast %14 : vector<1x1x32xf32> to vector<1x1x32xf32>
    %16 = vector.broadcast %15 : vector<1x1x32xf32> to vector<4x1x32xf32>
    %c0_20 = arith.constant 0 : index
    %c0_21 = arith.constant 0 : index
    %17 = vector.load %arg9[%c0_20, %c0_21] : memref<1x1xf32, #tpu.memory_space<vmem>>, vector<1x1xf32>
    %18 = vector.shape_cast %17 : vector<1x1xf32> to vector<1x1x1xf32>
    %19 = vector.shape_cast %18 : vector<1x1x1xf32> to vector<1x1x1xf32>
    %20 = vector.broadcast %19 : vector<1x1x1xf32> to vector<4x1x1xf32>
    "tpu.trace_start"() <{level = 10 : i32, message = "tnd,tdh->tnh"}> : () -> ()
    %cst = arith.constant dense<0.000000e+00> : vector<4x8x32xf32>
    %21 = tpu.matmul %0, %8, %cst {dimension_numbers = #tpu.dot_dimension_numbers<[2], [1], [1], [2], [0, 0, 0, 1, 1, 2], [0], [0]>} : vector<4x8x16xf32>, vector<4x16x32xf32>, vector<4x8x32xf32> -> vector<4x8x32xf32>
    "tpu.trace_stop"() : () -> ()
    %22 = vector.broadcast %12 : vector<4x1x32xf32> to vector<4x8x32xf32>
    %23 = arith.addf %21, %22 : vector<4x8x32xf32>
    %24 = arith.negf %23 : vector<4x8x32xf32>
    %25 = math.exp %24 : vector<4x8x32xf32>
    %cst_22 = arith.constant 1.000000e+00 : f32
    %26 = vector.broadcast %cst_22 : f32 to vector<4x8x32xf32>
    %27 = arith.addf %26, %25 : vector<4x8x32xf32>
    %28 = arith.divf %26, %27 : vector<4x8x32xf32>
    %29 = vector.broadcast %16 : vector<4x1x32xf32> to vector<4x8x32xf32>
    %30 = arith.mulf %28, %29 : vector<4x8x32xf32>
    %cst_23 = arith.constant dense<0.000000e+00> : vector<4x8xf32>
    %31 = vector.multi_reduction <add>, %30, %cst_23 [2] : vector<4x8x32xf32> to vector<4x8xf32>
    %32 = vector.shape_cast %31 : vector<4x8xf32> to vector<4x8x1xf32>
    %33 = vector.broadcast %20 : vector<4x1x1xf32> to vector<4x8x1xf32>
    %34 = arith.addf %32, %33 : vector<4x8x1xf32>
    %35 = arith.negf %34 : vector<4x8x1xf32>
    %36 = math.exp %35 : vector<4x8x1xf32>
    %cst_24 = arith.constant 1.000000e+00 : f32
    %37 = vector.broadcast %cst_24 : f32 to vector<4x8x1xf32>
    %38 = arith.addf %37, %36 : vector<4x8x1xf32>
    %39 = arith.divf %37, %38 : vector<4x8x1xf32>
    %40 = arith.subf %39, %2 : vector<4x8x1xf32>
    %cst_25 = arith.constant 1.250000e-01 : f32
    %41 = vector.broadcast %cst_25 : f32 to vector<4x8x1xf32>
    %42 = arith.mulf %40, %41 : vector<4x8x1xf32>
    %43 = vector.broadcast %42 : vector<4x8x1xf32> to vector<4x8x32xf32>
    %44 = arith.mulf %28, %43 : vector<4x8x32xf32>
    %cst_26 = arith.constant dense<0.000000e+00> : vector<4x32xf32>
    %45 = vector.multi_reduction <add>, %44, %cst_26 [1] : vector<4x8x32xf32> to vector<4x32xf32>
    %46 = vector.shape_cast %45 : vector<4x32xf32> to vector<4x1x32xf32>
    %cst_27 = arith.constant dense<0.000000e+00> : vector<4x1xf32>
    %47 = vector.multi_reduction <add>, %42, %cst_27 [1] : vector<4x8x1xf32> to vector<4x1xf32>
    %48 = vector.shape_cast %47 : vector<4x1xf32> to vector<4x1x1xf32>
    %49 = vector.broadcast %42 : vector<4x8x1xf32> to vector<4x8x32xf32>
    %50 = vector.broadcast %16 : vector<4x1x32xf32> to vector<4x8x32xf32>
    %51 = arith.mulf %49, %50 : vector<4x8x32xf32>
    %52 = arith.mulf %51, %28 : vector<4x8x32xf32>
    %cst_28 = arith.constant 1.000000e+00 : f32
    %53 = vector.broadcast %cst_28 : f32 to vector<4x8x32xf32>
    %54 = arith.subf %53, %28 : vector<4x8x32xf32>
    %55 = arith.mulf %52, %54 : vector<4x8x32xf32>
    "tpu.trace_start"() <{level = 10 : i32, message = "tdn,tnh->tdh"}> : () -> ()
    %cst_29 = arith.constant dense<0.000000e+00> : vector<4x16x32xf32>
    %56 = tpu.matmul %1, %55, %cst_29 {dimension_numbers = #tpu.dot_dimension_numbers<[2], [1], [1], [2], [0, 0, 0, 1, 1, 2], [0], [0]>} : vector<4x16x8xf32>, vector<4x8x32xf32>, vector<4x16x32xf32> -> vector<4x16x32xf32>
    "tpu.trace_stop"() : () -> ()
    %cst_30 = arith.constant dense<0.000000e+00> : vector<4x32xf32>
    %57 = vector.multi_reduction <add>, %55, %cst_30 [1] : vector<4x8x32xf32> to vector<4x32xf32>
    %58 = vector.shape_cast %57 : vector<4x32xf32> to vector<4x1x32xf32>
    %cst_31 = arith.constant 5.000000e-02 : f32
    %59 = vector.broadcast %cst_31 : f32 to vector<4x16x32xf32>
    %60 = arith.mulf %59, %56 : vector<4x16x32xf32>
    %61 = arith.subf %8, %60 : vector<4x16x32xf32>
    %cst_32 = arith.constant 5.000000e-02 : f32
    %62 = vector.broadcast %cst_32 : f32 to vector<4x1x32xf32>
    %63 = arith.mulf %62, %58 : vector<4x1x32xf32>
    %64 = arith.subf %12, %63 : vector<4x1x32xf32>
    %cst_33 = arith.constant 5.000000e-02 : f32
    %65 = vector.broadcast %cst_33 : f32 to vector<4x1x32xf32>
    %66 = arith.mulf %65, %46 : vector<4x1x32xf32>
    %67 = arith.subf %16, %66 : vector<4x1x32xf32>
    %cst_34 = arith.constant 5.000000e-02 : f32
    %68 = vector.broadcast %cst_34 : f32 to vector<4x1x1xf32>
    %69 = arith.mulf %68, %48 : vector<4x1x1xf32>
    %70 = arith.subf %20, %69 : vector<4x1x1xf32>
    "tpu.trace_start"() <{level = 10 : i32, message = "tnd,tdh->tnh"}> : () -> ()
    %cst_35 = arith.constant dense<0.000000e+00> : vector<4x8x32xf32>
    %71 = tpu.matmul %3, %61, %cst_35 {dimension_numbers = #tpu.dot_dimension_numbers<[2], [1], [1], [2], [0, 0, 0, 1, 1, 2], [0], [0]>} : vector<4x8x16xf32>, vector<4x16x32xf32>, vector<4x8x32xf32> -> vector<4x8x32xf32>
    "tpu.trace_stop"() : () -> ()
    %72 = vector.broadcast %64 : vector<4x1x32xf32> to vector<4x8x32xf32>
    %73 = arith.addf %71, %72 : vector<4x8x32xf32>
    %74 = arith.negf %73 : vector<4x8x32xf32>
    %75 = math.exp %74 : vector<4x8x32xf32>
    %cst_36 = arith.constant 1.000000e+00 : f32
    %76 = vector.broadcast %cst_36 : f32 to vector<4x8x32xf32>
    %77 = arith.addf %76, %75 : vector<4x8x32xf32>
    %78 = arith.divf %76, %77 : vector<4x8x32xf32>
    %79 = vector.broadcast %67 : vector<4x1x32xf32> to vector<4x8x32xf32>
    %80 = arith.mulf %78, %79 : vector<4x8x32xf32>
    %cst_37 = arith.constant dense<0.000000e+00> : vector<4x8xf32>
    %81 = vector.multi_reduction <add>, %80, %cst_37 [2] : vector<4x8x32xf32> to vector<4x8xf32>
    %82 = vector.shape_cast %81 : vector<4x8xf32> to vector<4x8x1xf32>
    %83 = vector.broadcast %70 : vector<4x1x1xf32> to vector<4x8x1xf32>
    %84 = arith.addf %82, %83 : vector<4x8x1xf32>
    %cst_38 = arith.constant 0.000000e+00 : f32
    %85 = vector.broadcast %cst_38 : f32 to vector<4x8x1xf32>
    %86 = arith.maximumf %84, %85 : vector<4x8x1xf32>
    %87 = arith.mulf %84, %4 : vector<4x8x1xf32>
    %88 = arith.subf %86, %87 : vector<4x8x1xf32>
    %89 = math.absf %84 : vector<4x8x1xf32>
    %cst_39 = arith.constant 0.000000e+00 : f32
    %90 = vector.broadcast %cst_39 : f32 to vector<4x8x1xf32>
    %91 = arith.subf %90, %89 : vector<4x8x1xf32>
    %92 = math.exp %91 : vector<4x8x1xf32>
    %93 = math.log1p %92 : vector<4x8x1xf32>
    %94 = arith.addf %88, %93 : vector<4x8x1xf32>
    %cst_40 = arith.constant dense<0.000000e+00> : vector<4x1xf32>
    %95 = vector.multi_reduction <add>, %94, %cst_40 [1] : vector<4x8x1xf32> to vector<4x1xf32>
    %96 = vector.shape_cast %95 : vector<4x1xf32> to vector<4x1x1xf32>
    %cst_41 = arith.constant 1.250000e-01 : f32
    %97 = vector.broadcast %cst_41 : f32 to vector<4x1x1xf32>
    %98 = arith.mulf %96, %97 : vector<4x1x1xf32>
    %99 = tpu.iota {dimensions = array<i32: 0>} : vector<4x1x4xi32>
    %100 = tpu.iota {dimensions = array<i32: 2>} : vector<4x1x4xi32>
    %101 = vector.shape_cast %98 : vector<4x1x1xf32> to vector<4x1x1xf32>
    %102 = vector.broadcast %101 : vector<4x1x1xf32> to vector<4x1x4xf32>
    %103 = arith.cmpi eq, %99, %100 : vector<4x1x4xi32>
    %cst_42 = arith.constant 0.000000e+00 : f32
    %104 = vector.broadcast %cst_42 : f32 to vector<4x1x4xf32>
    %105 = arith.select %103, %102, %104 : vector<4x1x4xi1>, vector<4x1x4xf32>
    %cst_43 = arith.constant dense<0.000000e+00> : vector<1x4xf32>
    %106 = vector.multi_reduction <add>, %105, %cst_43 [0] : vector<4x1x4xf32> to vector<1x4xf32>
    %107 = vector.shape_cast %106 : vector<1x4xf32> to vector<1x1x4xf32>
    %c0_44 = arith.constant 0 : index
    %c0_45 = arith.constant 0 : index
    %c0_46 = arith.constant 0 : index
    %108 = vector.load %arg10[%c0_44, %c0_45, %c0_46] : memref<1x1x4xf32, #tpu.memory_space<vmem>>, vector<1x1x4xf32>
    tpu.vector_store %arg10[%c0_44, %c0_45, %c0_46], %107 {strides = array<i32>} : memref<1x1x4xf32, #tpu.memory_space<vmem>>, vector<1x1x4xf32>,
    return
  }
  func.func @transform_0(%arg0: i32) -> (i32, i32, i32) {
    %c0_i32 = arith.constant 0 : i32
    %c0_i32_0 = arith.constant 0 : i32
    %c0_i32_1 = arith.constant 0 : i32
    return %arg0, %c0_i32, %c0_i32_0 : i32, i32, i32
  }
  func.func @transform_1(%arg0: i32) -> (i32, i32, i32) {
    %c0_i32 = arith.constant 0 : i32
    %c0_i32_0 = arith.constant 0 : i32
    %c0_i32_1 = arith.constant 0 : i32
    return %arg0, %c0_i32, %c0_i32_0 : i32, i32, i32
  }
  func.func @transform_2(%arg0: i32) -> (i32, i32, i32) {
    %c0_i32 = arith.constant 0 : i32
    %c0_i32_0 = arith.constant 0 : i32
    %c0_i32_1 = arith.constant 0 : i32
    return %arg0, %c0_i32, %c0_i32_0 : i32, i32, i32
  }
  func.func @transform_3(%arg0: i32) -> (i32, i32, i32) {
    %c0_i32 = arith.constant 0 : i32
    %c0_i32_0 = arith.constant 0 : i32
    %c0_i32_1 = arith.constant 0 : i32
    return %arg0, %c0_i32, %c0_i32_0 : i32, i32, i32
  }
  func.func @transform_4(%arg0: i32) -> (i32, i32, i32) {
    %c0_i32 = arith.constant 0 : i32
    %c0_i32_0 = arith.constant 0 : i32
    %c0_i32_1 = arith.constant 0 : i32
    return %arg0, %c0_i32, %c0_i32_0 : i32, i32, i32
  }
  func.func @transform_5(%arg0: i32) -> (i32, i32) {
    %c0_i32 = arith.constant 0 : i32
    %c0_i32_0 = arith.constant 0 : i32
    %c0_i32_1 = arith.constant 0 : i32
    return %c0_i32, %c0_i32_0 : i32, i32
  }
  func.func @transform_6(%arg0: i32) -> (i32, i32) {
    %c0_i32 = arith.constant 0 : i32
    %c0_i32_0 = arith.constant 0 : i32
    %c0_i32_1 = arith.constant 0 : i32
    return %c0_i32, %c0_i32_0 : i32, i32
  }
  func.func @transform_7(%arg0: i32) -> (i32, i32) {
    %c0_i32 = arith.constant 0 : i32
    %c0_i32_0 = arith.constant 0 : i32
    %c0_i32_1 = arith.constant 0 : i32
    return %c0_i32, %c0_i32_0 : i32, i32
  }
  func.func @transform_8(%arg0: i32) -> (i32, i32) {
    %c0_i32 = arith.constant 0 : i32
    %c0_i32_0 = arith.constant 0 : i32
    %c0_i32_1 = arith.constant 0 : i32
    return %c0_i32, %c0_i32_0 : i32, i32
  }
  func.func @transform_9(%arg0: i32) -> (i32, i32, i32) {
    %c0_i32 = arith.constant 0 : i32
    %c0_i32_0 = arith.constant 0 : i32
    %c0_i32_1 = arith.constant 0 : i32
    return %arg0, %c0_i32, %c0_i32_0 : i32, i32, i32
  }
}

</mosaic_0001>

<bundles_post_ra>
// kernel: tpu_custom_call.1
= control target key start
LH: loop header
LB: loop body
LE: loop exit
PB: predicated region body
PF: predicated region fallthrough
CT: control target
= control target key end

     0   :  { %s2757_s0 = inlined_call_operand.vmem [shape: f32[8,8,16], index: 0, kind: input, shape index: {}]   ;;  %s2758_s1 = inlined_call_operand.vmem [shape: f32[8,16,8], index: 1, kind: input, shape index: {}]   ;;  %s2759_s2 = inlined_call_operand.vmem [shape: f32[8,8,1], index: 2, kind: input, shape index: {}]   ;;  %s2760_s3 = inlined_call_operand.vmem [shape: f32[8,8,16], index: 3, kind: input, shape index: {}]   ;;  %s2761_s4 = inlined_call_operand.vmem [shape: f32[8,8,1], index: 4, kind: input, shape index: {}]   ;;  %s2762_s5 = inlined_call_operand.vmem [shape: f32[16,32], index: 5, kind: input, shape index: {}]   ;;  %s2763_s6 = inlined_call_operand.vmem [shape: f32[1,32], index: 6, kind: input, shape index: {}]   ;;  %s2764_s7 = inlined_call_operand.vmem [shape: f32[1,32], index: 7, kind: input, shape index: {}]   ;;  %s2765_s8 = inlined_call_operand.<no memory space> [shape: f32[1,1], index: 8, kind: input, shape index: {}]   ;;  %s2766_s9 = inlined_call_operand.hbm [shape: f32[2,1,4], index: 9, kind: output, shape index: {}]  }
   0x1   :  { %v14_v0 = vstv %s2765_s8 }
   0x2   :  { %15 = vst [vmem:[#allocation2] sm:$0x1] %v14_v0 }
   0x3   :  { %16 = vsyncpa [#allocation4], 0 }
   0x4   :  { %18 = vsyncpa [#allocation4 + $0x1], 0  ;;  %s2382_s11 = smov 0   ;;  %s2384_s12 = smov 0  }
   0x5   :  { %s2386_s13 = smov 0   ;;  %s2388_s14 = smov 0  }
   0x6 LB: > { %s2403_s8 = sadd.s32 4294967295, %s2323_s14   ;;  %s1996_s15 = sadd.s32 4294967294, %s2323_s14   ;;  %s2323_s14 = sphi %s2388_s14, %s2772_s14   ;;  %s2319_s13 = sphi %s2386_s13, %s2771_s13   ;;  %s2315_s12 = sphi %s2384_s12, %s2770_s12   ;;  %s2311_s11 = sphi %s2382_s11, %s2769_s11  }
   0x7   : > { %s2407_s16 = sadd.s32 1, %s2323_s14   ;;  %s245_s17 = sadd.s32 1, %s2319_s13 }
   0x8   : > { %s242_s18 = ssub.s32 %s2323_s14, %s2407_s16  ;;  %p255_p0 = scmp.ne.s32.totalorder %s2319_s13, %s2315_s12 }
   0x9   : > { %p243_p1 = scmp.eq.s32.totalorder %s242_s18, 0  ;;  %p256_p2 = scmp.eq.s32.totalorder %s2403_s8, 1 }
   0xa   : > { %p261_p3 = scmp.ne.s32.totalorder %s2315_s12, %s2311_s11  ;;  %p262_p4 = scmp.eq.s32.totalorder %s1996_s15, 1 }
   0xb   : > { %s2418_s19 = scalar_select %p243_p1, %s2319_s13, %s245_s17  }
   0xc   : > { %p2420_p5 = por %p256_p2, %p255_p0  ;;  %p2424_p6 = por %p262_p4, %p261_p3 }
   0xd   : > { %p1999_p7 = scmp.ge.s32.totalorder %s2323_s14, 1  ;;  %p338_p8 = scmp.lt.s32.totalorder %s2323_s14, 3 }
   0xf   : > { %p339_p9 = pnand %p1999_p7, %p338_p8 }
  0x10   : > { %s2000_s24 = sshll.u32 (!%p339_p9), %s2403_s8, 2  ;;  %s2039_s23 = sshll.u32 (!%p339_p9), %s2403_s8, 4 }
  0x11   : > { %342 = sbr.rel (%p339_p9) target bundleno = 1346 (0x542), region = 56  ;;  %p395_p10 = scmp.lt.s32.totalorder (!%p339_p9), %s2000_s24, 7 }
  0x12   : > { %s2328_s8 = smov (!%p339_p9), [#allocation3]  }
  0x16   : > { %v2433_v1 = vld [vmem:[%s2762_s5 + $0x8] sm:$0xff]  ;;  %v2325_v2 = vmov 0.0   ;;  %v2441_v3 = vld [vmem:[%s2762_s5] sm:$0xff]  ;;  %vm2326_vm0 = vmmov 0   ;;  %s2774_s24 = smov (!%p395_p10, %s2000_s24), 7  ;;  %vm460_vm1 = vcmask 130048   ;;  %v455_v8 = vlaneseq }
  0x17   : > { %2079 = vmatprep.subr.mxu0 %v2325_v2  ;;  %2086 = vmatprep.subr.mxu1 %v2325_v2  ;;  %s2453_s27 = sshll.u32 %s2774_s24, 3  ;;  %v2484_v11 = vld [vmem:[%s2763_s6] sm:$0x1]  ;;  %vm787_vm2 = vcmask 261120   ;;  %v2327_v51 = vmov 0   ;;  %s2042_s26 = sshll.u32 %s2774_s24, 4 }
  0x18   : > { %2080 = vmatpush3.msra.mxu0 %v2433_v1  ;;  %2083 = vmatprep.mubr.msk.f32.mxu0 %vm2326_vm0, %v2325_v2  ;;  %s398_s30 = scalar_lea.vmem %s2757_s0, %s2453_s27  ;;  %v456_v9 = vshrl.u32 %v455_v8, 7  ;;  %v2491_v37 = vld [vmem:[%s2764_s7] sm:$0x1]  ;;  %s411_s25 = scalar_lea.vmem %s2759_s2, %s2453_s27  ;;  %vm939_vm3 = vcmask 64512   ;;  %vm894_vm4 = vcmask 7168   ;;  %vm1870_vm12 = vcmask 31744  }
  0x19   : > { %2081 = vmatprep.subr.mxu0 %v2325_v2  ;;  %2087 = vmatpush3.msra.mxu1 %v2433_v1  ;;  %v425_v4 = vld [vmem:[%s398_s30] sm:$0xff]  ;;  %v426_v5 = vld [vmem:[%s398_s30 + $0x8] sm:$0xff]  ;;  %v427_v6 = vld [vmem:[%s398_s30 + $0x10] sm:$0xff]  ;;  %s2609_s15 = scalar_lea.vmem %s2760_s3, %s2453_s27  ;;  %s2706_s22 = scalar_lea.vmem %s2761_s4, %s2453_s27  ;;  %vm1878_vm14 = vcmask 24576  }
  0x1a   : > { %2082 = vmatpush3.msra.mxu0 %v2441_v3  ;;  %2088 = vmatprep.subr.mxu1 %v2325_v2  ;;  %v428_v7 = vld [vmem:[%s398_s30 + $0x18] sm:$0xff]  ;;  %v2479_v10 = vsub.s32 0, %v456_v9  ;;  %v2517_v52 = vld [vmem:[#allocation2] sm:$0x1]  ;;  %s2531_s30 = scalar_lea.vmem %s2758_s1, %s2042_s26  ;;  %s392_s27 = sand.u32 1, %s2315_s12  }
  0x1b   : > { %2093 = vmatprep.subr.mxu0 %v2325_v2  ;;  %2089 = vmatpush3.msra.mxu1 %v2441_v3  ;;  %s1881_s24 = scalar_lea.sflag [#allocation4], %s392_s27 }
  0x1c   : > { %2090 = vmatprep.mubr.msk.f32.mxu1 %vm2326_vm0, %v2325_v2  ;;  %2100 = vmatprep.subr.mxu1 %v2325_v2  ;;  %v458_v12 = vrot.slane %v2484_v11, %v2479_v10  ;;  %v2495_v38 = vrot.slane %v2491_v37, %v2479_v10  ;;  %v804_v53 = vrot.slane %v2517_v52, %v2479_v10 }
  0x1d   : > { %2084 = vmatmul.mubr.msk.f32.vlgmr.msra.gmra.mxu0 %vm460_vm1, %v425_v4  ;;  %2091 = vmatmul.mubr.msk.f32.vlgmr.msra.gmra.mxu1 %vm460_vm1, %v426_v5 }
  0x1e   : > { %2094 = vmatpush3.msra.mxu0 %v2433_v1  ;;  %2097 = vmatprep.mubr.msk.f32.mxu0 %vm2326_vm0, %v2325_v2 }
  0x1f   : > { %2095 = vmatprep.subr.mxu0 %v2325_v2  ;;  %2101 = vmatpush3.msra.mxu1 %v2433_v1 }
  0x20   : > { %2096 = vmatpush3.msra.mxu0 %v2441_v3  ;;  %2102 = vmatprep.subr.mxu1 %v2325_v2 }
  0x21   : > { %2098 = vmatmul.mubr.msk.f32.vlgmr.msra.gmra.mxu0 %vm460_vm1, %v427_v6  ;;  %2103 = vmatpush3.msra.mxu1 %v2441_v3 }
  0x22   : > { %2104 = vmatprep.mubr.msk.f32.mxu1 %vm2326_vm0, %v2325_v2  ;;  %2197 = vset.pattern.permute.xlu0 %v2327_v51 }
  0x23   : > { %2105 = vmatmul.mubr.msk.f32.vlgmr.msra.gmra.mxu1 %vm460_vm1, %v428_v7  ;;  %2198 = vset.pattern.permute.xlu1 %v2327_v51 }
  0xdd   : > { %v530_v13 = vpop.f32.mrf.mxu0  ;;  %v603_v14 = vpop.f32.mrf.mxu1 }
  0xde   : > { %v531_v15 = vadd.f32 %v530_v13, %v458_v12  ;;  %v604_v16 = vadd.f32 %v603_v14, %v458_v12 }
  0xdf   : > { %v2085_v17 = vpop.f32.mrf.mxu0  ;;  %v2092_v18 = vpop.f32.mrf.mxu1 }
  0xe0   : > { %v2015_v19 = vmul.f32 -1.442695, %v531_v15  ;;  %v2016_v20 = vmul.f32 -1.442695, %v604_v16  ;;  %v437_v16 = vld [vmem:[%s411_s25] sm:$0xff] }
  0xe1   : > { %v676_v21 = vpop.f32.mrf.mxu0 }
  0xe2   : > { %2199 = vpow2.f32 %v2015_v19  ;;  %v677_v22 = vadd.f32 %v676_v21, %v458_v12  ;;  %v438_v19 = vld [vmem:[%s411_s25 + $0x8] sm:$0xff] }
  0xe3   : > { %2201 = vpow2.f32 %v2016_v20  ;;  %v2099_v23 = vpop.f32.mrf.mxu0  ;;  %v749_v24 = vpop.f32.mrf.mxu1 }
  0xe4   : > { %v2017_v25 = vmul.f32 -1.442695, %v677_v22  ;;  %v750_v26 = vadd.f32 %v749_v24, %v458_v12  ;;  %v439_v22 = vld [vmem:[%s411_s25 + $0x10] sm:$0xff] }
  0xe5   : > { %v2106_v27 = vpop.f32.mrf.mxu1 }
  0xe6   : > { %2203 = vpow2.f32 %v2017_v25  ;;  %v2018_v28 = vmul.f32 -1.442695, %v750_v26 }
  0xe8   : > { %2205 = vpow2.f32 %v2018_v28  ;;  %v440_v28 = vld [vmem:[%s411_s25 + $0x18] sm:$0xff]  ;;  %s393_s25 = scalar_lea.vmem [#allocation3], %s392_s27 }
  0xe9   : > { %s1893_s26 = sshll.u32 %s393_s25, 4  ;;  %s1894_s26 = int_to_ptr.vmem [resolvable:$true] %s1893_s26 }
  0xea   : > { %s2263_s10 = scalar_lea.vmem %s1894_s26, 16 }
  0xeb   : > { %p2264_p11 = scmp.ne.s32.totalorder %s1894_s26, %s2263_s10 }
  0xed   : > { %p2265_p12 = pnand %p2264_p11, %p2420_p5 }
  0xef   : > { %v2200_v29 = vpop.eup %2199  ;;  %p2266_p13 = pneg %p2265_p12 }
  0xf0   : > { %v2202_v30 = vpop.eup %2201  ;;  %v765_v31 = vadd.f32 1.0, %v2200_v29  ;;  %v429_v29 = vld [vmem:[%s2531_s30] sm:$0xff] }
  0xf1   : > { %v766_v32 = vadd.f32 1.0, %v2202_v30  ;;  %2109 = vmatprep.mubr.msk.f32.mxu0 %vm939_vm3, %v429_v29 }
  0xf2   : > { %2207 = vrcp.f32 %v765_v31 }
  0xf3   : > { %v2204_v33 = vpop.eup %2203  ;;  %2209 = vrcp.f32 %v766_v32  ;;  %v431_v32 = vld [vmem:[%s2531_s30 + $0x10] sm:$0xff] }
  0xf4   : > { %v767_v34 = vadd.f32 1.0, %v2204_v33  ;;  %2114 = vmatprep.mubr.msk.f32.mxu1 %vm939_vm3, %v431_v32 }
  0xf5   : > { %v2206_v35 = vpop.eup %2205 }
  0xf6   : > { %2211 = vrcp.f32 %v767_v34  ;;  %v768_v36 = vadd.f32 1.0, %v2206_v35 }
  0xf8   : > { %2213 = vrcp.f32 %v768_v36 }
  0xff   : > { %v2497_v39 = vpop.eup %2207 }
 0x100   : > { %v2499_v40 = vpop.eup %2209  ;;  %v783_v41 = vmul.f32 %v2497_v39, %v2495_v38 }
 0x101   : > { %v784_v42 = vmul.f32 %v2499_v40, %v2495_v38 }
 0x102   : > { %v788_v43 = vsel %vm787_vm2, %v783_v41, 0.0  ;;  %v931_v41 = vsub.f32 1.0, %v2497_v39 }
 0x103   : > { %v2506_v44 = vpop.eup %2211  ;;  %789 = vadd.xlane.f32.xlu0 %v788_v43  ;;  %v791_v45 = vsel %vm787_vm2, %v784_v42, 0.0 }
 0x104   : > { %v785_v46 = vmul.f32 %v2506_v44, %v2495_v38 }
 0x105   : > { %v2511_v47 = vpop.eup %2213 }
 0x106   : > { %v794_v48 = vsel %vm787_vm2, %v785_v46, 0.0  ;;  %v786_v49 = vmul.f32 %v2511_v47, %v2495_v38  ;;  %v430_v46 = vld [vmem:[%s2531_s30 + $0x8] sm:$0xff] }
 0x107   : > { %792 = vadd.xlane.f32.xlu0 %v791_v45  ;;  %795 = vadd.xlane.f32.xlu1 %v794_v48 }
 0x108   : > { %v797_v50 = vsel %vm787_vm2, %v786_v49, 0.0  ;;  %v932_v49 = vsub.f32 1.0, %v2499_v40 }
 0x10b   : > { %798 = vadd.xlane.f32.xlu1 %v797_v50  ;;  %v433_v50 = vld [vmem:[%s2531_s30 + $0x20] sm:$0xff] }
 0x18c   : > { %v790_v54 = vpop.xlane.xlu0 %789 }
 0x18d   : > { %v806_v55 = vadd.f32 %v804_v53, %v790_v54 }
 0x18f   : > { %v2019_v56 = vmul.f32 -1.442695, %v806_v55  ;;  %v432_v55 = vld [vmem:[%s2531_s30 + $0x18] sm:$0xff] }
 0x190   : > { %v793_v57 = vpop.xlane.xlu0 %792  ;;  %v796_v58 = vpop.xlane.xlu1 %795 }
 0x191   : > { %2215 = vpow2.f32 %v2019_v56  ;;  %v807_v59 = vadd.f32 %v804_v53, %v793_v57  ;;  %v808_v60 = vadd.f32 %v804_v53, %v796_v58  ;;  %v933_v57 = vsub.f32 1.0, %v2506_v44  ;;  %v435_v58 = vld [vmem:[%s2531_s30 + $0x30] sm:$0xff] }
 0x193   : > { %v2020_v61 = vmul.f32 -1.442695, %v807_v59  ;;  %v2021_v62 = vmul.f32 -1.442695, %v808_v60 }
 0x194   : > { %v799_v63 = vpop.xlane.xlu1 %798 }
 0x195   : > { %2217 = vpow2.f32 %v2020_v61  ;;  %v809_v0 = vadd.f32 %v804_v53, %v799_v63 }
 0x196   : > { %2219 = vpow2.f32 %v2021_v62  ;;  %v434_v62 = vld [vmem:[%s2531_s30 + $0x28] sm:$0xff] }
 0x197   : > { %v2022_v4 = vmul.f32 -1.442695, %v809_v0  ;;  %v934_v0 = vsub.f32 1.0, %v2511_v47 }
 0x199   : > { %2221 = vpow2.f32 %v2022_v4 }
 0x19e   : > { %v2216_v5 = vpop.eup %2215 }
 0x19f   : > { %v822_v6 = vadd.f32 1.0, %v2216_v5 }
 0x1a1   : > { %2223 = vrcp.f32 %v822_v6 }
 0x1a2   : > { %v2218_v7 = vpop.eup %2217 }
 0x1a3   : > { %v2220_v9 = vpop.eup %2219  ;;  %v823_v12 = vadd.f32 1.0, %v2218_v7 }
 0x1a4   : > { %v824_v13 = vadd.f32 1.0, %v2220_v9 }
 0x1a5   : > { %2225 = vrcp.f32 %v823_v12 }
 0x1a6   : > { %v2222_v14 = vpop.eup %2221  ;;  %2227 = vrcp.f32 %v824_v13 }
 0x1a7   : > { %v825_v15 = vadd.f32 1.0, %v2222_v14 }
 0x1a9   : > { %2229 = vrcp.f32 %v825_v15 }
 0x1ae   : > { %v2224_v17 = vpop.eup %2223 }
 0x1af   : > { %v834_v18 = vsub.f32 %v2224_v17, %v437_v16  ;;  %v441_v16 = vld [vmem:[%s2609_s15] sm:$0xff] }
 0x1b1   : > { %v2526_v20 = vmul.f32 0.125, %v834_v18 }
 0x1b2   : > { %v2226_v21 = vpop.eup %2225 }
 0x1b3   : > { %v2228_v23 = vpop.eup %2227  ;;  %844 = vperm.xlu0 %2197, %v2526_v20   ;;  %v835_v24 = vsub.f32 %v2226_v21, %v438_v19 }
 0x1b4   : > { %v836_v26 = vsub.f32 %v2228_v23, %v439_v22 }
 0x1b5   : > { %v2534_v25 = vmul.f32 0.125, %v835_v24  ;;  %v442_v24 = vld [vmem:[%s2609_s15 + $0x8] sm:$0xff] }
 0x1b6   : > { %v2230_v27 = vpop.eup %2229  ;;  %v2539_v30 = vmul.f32 0.125, %v836_v26 }
 0x1b7   : > { %849 = vperm.xlu1 %2198, %v2534_v25   ;;  %v837_v31 = vsub.f32 %v2230_v27, %v440_v28 }
 0x1b9   : > { %v2544_v33 = vmul.f32 0.125, %v837_v31 }
 0x1bb   : > { %854 = vperm.xlu1 %2198, %v2539_v30  }
 0x1bf   : > { %859 = vperm.xlu1 %2198, %v2544_v33  }
 0x22e   : > { %v2547_v34 = vpop.permute.xlu0 %844 }
 0x22f   : > { %v923_v35 = vmul.f32 %v2547_v34, %v2495_v38 }
 0x231   : > { %v927_v36 = vmul.f32 %v2497_v39, %v923_v35  ;;  %v443_v35 = vld [vmem:[%s2609_s15 + $0x10] sm:$0xff] }
 0x232   : > { %v2553_v42 = vpop.permute.xlu1 %849 }
 0x233   : > { %v924_v43 = vmul.f32 %v2553_v42, %v2495_v38  ;;  %v2557_v45 = vmul.f32 %v931_v41, %v927_v36 }
 0x235   : > { %v928_v48 = vmul.f32 %v2499_v40, %v924_v43  ;;  %2107 = vmatprep.subr.mxu0 %v2557_v45 }
 0x236   : > { %2108 = vmatpush3.msra.mxu0 %v2557_v45  ;;  %v2565_v51 = vpop.permute.xlu1 %854 }
 0x237   : > { %v925_v53 = vmul.f32 %v2565_v51, %v2495_v38  ;;  %2110 = vmatmul.mubr.msk.f32.vlgmr.msra.gmra.mxu0 %vm939_vm3, %v430_v46  ;;  %v2570_v54 = vmul.f32 %v932_v49, %v928_v48  ;;  %v444_v48 = vld [vmem:[%s2609_s15 + $0x18] sm:$0xff]  ;;  %v1264_v49 = vsel %vm787_vm2, %v2557_v45, 0.0  ;;  %s2267_s15 = sshll.u32 %s2328_s8, 4  ;;  %s2268_s15 = int_to_ptr.vmem [resolvable:$false] %s2267_s15 }
 0x238   : > { %2119 = vmatprep.mubr.msk.f32.mxu0 %vm939_vm3, %v433_v50  ;;  %v1265_v50 = vrot.slane %v1264_v49, 4  ;;  %s2269_s17 = scalar_lea.vmem %s2268_s15, 32  ;;  %p2270_p0 = scmp.lt.s32.totalorder %s1894_s26, %s2268_s15 }
 0x239   : > { %v929_v56 = vmul.f32 %v2506_v44, %v925_v53  ;;  %2112 = vmatprep.subr.mxu1 %v2570_v54  ;;  %p2271_p1 = scmp.lt.s32.totalorder %s2269_s17, %s2263_s10 }
 0x23a   : > { %2113 = vmatpush3.msra.mxu1 %v2570_v54  ;;  %v2579_v59 = vpop.permute.xlu1 %859  ;;  %v1266_v53 = vadd.f32 %v1265_v50, %v1264_v49 }
 0x23b   : > { %v926_v60 = vmul.f32 %v2579_v59, %v2495_v38  ;;  %2115 = vmatmul.mubr.msk.f32.vlgmr.msra.gmra.mxu1 %vm939_vm3, %v432_v55  ;;  %v2584_v61 = vmul.f32 %v933_v57, %v929_v56  ;;  %v436_v38 = vld [vmem:[%s2531_s30 + $0x38] sm:$0xff]  ;;  %v865_v50 = vmul.f32 %v2511_v47, %v2579_v59  ;;  %s1891_s30 = scalar_lea.hbm %s2766_s9, %s2039_s23  ;;  %p2272_p2 = por %p2271_p1, %p2270_p0 }
 0x23c   : > { %2124 = vmatprep.mubr.msk.f32.mxu1 %vm939_vm3, %v435_v58  ;;  %v1267_v58 = vrot.slane %v1266_v53, 2 }
 0x23d   : > { %v930_v63 = vmul.f32 %v2511_v47, %v926_v60  ;;  %2117 = vmatprep.subr.mxu0 %v2584_v61  ;;  %v1278_v56 = vsel %vm787_vm2, %v2584_v61, 0.0  ;;  %p2273_p3 = pnand %p2272_p2, %p2266_p13 }
 0x23e   : > { %2118 = vmatpush3.msra.mxu0 %v2584_v61  ;;  %v1279_v57 = vrot.slane %v1278_v56, 4 }
 0x23f   : > { %2120 = vmatmul.mubr.msk.f32.vlgmr.msra.gmra.mxu0 %vm939_vm3, %v434_v62  ;;  %v2593_v4 = vmul.f32 %v934_v0, %v930_v63  ;;  %2127 = vmatprep.subr.mxu0 %v2325_v2  ;;  %v1268_v63 = vadd.f32 %v1267_v58, %v1266_v53 }
 0x240   : > { %2131 = vmatprep.mubr.msk.f32.mxu0 %vm2326_vm0, %v2325_v2  ;;  %v1280_v60 = vadd.f32 %v1279_v57, %v1278_v56 }
 0x241   : > { %2122 = vmatprep.subr.mxu1 %v2593_v4 }
 0x242   : > { %2123 = vmatpush3.msra.mxu1 %v2593_v4 }
 0x243   : > { %2125 = vmatmul.mubr.msk.f32.vlgmr.msra.gmra.mxu1 %vm939_vm3, %v436_v38  ;;  %2134 = vmatprep.subr.mxu1 %v2325_v2  ;;  %v1269_v38 = vrot.slane %v1268_v63, 1 }
 0x244   : > { %2138 = vmatprep.mubr.msk.f32.mxu1 %vm2326_vm0, %v2325_v2 }
 0x2f7   : > { %v2111_v5 = vpop.f32.mrf.mxu0 }
 0x2f8   : > { %v1293_v6 = vmul.f32 0.05, %v2111_v5 }
 0x2f9   : > { %v1012_v7 = vpop.f32.mrf.mxu0 }
 0x2fa   : > { %v1301_v9 = vsub.f32 %v2433_v1, %v1293_v6  ;;  %v1292_v12 = vmul.f32 0.05, %v1012_v7  ;;  %v1281_v6 = vrot.slane %v1280_v60, 2 }
 0x2fb   : > { %v2116_v13 = vpop.f32.mrf.mxu1 }
 0x2fc   : > { %v1300_v14 = vsub.f32 %v2441_v3, %v1292_v12  ;;  %v1295_v15 = vmul.f32 0.05, %v2116_v13  ;;  %2128 = vmatpush3.msra.mxu0 %v1301_v9  ;;  %v1282_v9 = vadd.f32 %v1281_v6, %v1280_v60 }
 0x2fd   : > { %v1093_v17 = vpop.f32.mrf.mxu1  ;;  %2129 = vmatprep.subr.mxu0 %v2325_v2 }
 0x2fe   : > { %v1303_v18 = vsub.f32 %v2433_v1, %v1295_v15  ;;  %v1294_v19 = vmul.f32 0.05, %v1093_v17  ;;  %2130 = vmatpush3.msra.mxu0 %v1300_v14  ;;  %v1283_v14 = vrot.slane %v1282_v9, 1 }
 0x2ff   : > { %v2121_v21 = vpop.f32.mrf.mxu0  ;;  %2132 = vmatmul.mubr.msk.f32.vlgmr.msra.gmra.mxu0 %vm460_vm1, %v441_v16  ;;  %2141 = vmatprep.subr.mxu0 %v2325_v2  ;;  %v862_v16 = vmul.f32 %v2497_v39, %v2547_v34 }
 0x300   : > { %v1302_v22 = vsub.f32 %v2441_v3, %v1294_v19  ;;  %v1297_v23 = vmul.f32 0.05, %v2121_v21  ;;  %2135 = vmatpush3.msra.mxu1 %v1303_v18  ;;  %2145 = vmatprep.mubr.msk.f32.mxu0 %vm2326_vm0, %v2325_v2  ;;  %v1284_v18 = vadd.f32 %v1283_v14, %v1282_v9 }
 0x301   : > { %v1174_v26 = vpop.f32.mrf.mxu0  ;;  %2136 = vmatprep.subr.mxu1 %v2325_v2  ;;  %v866_v21 = vsel %vm787_vm2, %v862_v16, 0.0 }
 0x302   : > { %v1305_v27 = vsub.f32 %v2433_v1, %v1297_v23  ;;  %v1296_v28 = vmul.f32 0.05, %v1174_v26  ;;  %2137 = vmatpush3.msra.mxu1 %v1302_v22  ;;  %v863_v22 = vmul.f32 %v2499_v40, %v2553_v42  ;;  %v1310_v26 = vmul.f32 0.05, %v1284_v18 }
 0x303   : > { %v2126_v29 = vpop.f32.mrf.mxu1  ;;  %2139 = vmatmul.mubr.msk.f32.vlgmr.msra.gmra.mxu1 %vm460_vm1, %v442_v24  ;;  %2148 = vmatprep.subr.mxu1 %v2325_v2 }
 0x304   : > { %v1304_v31 = vsub.f32 %v2441_v3, %v1296_v28  ;;  %v1299_v32 = vmul.f32 0.05, %v2126_v29  ;;  %2142 = vmatpush3.msra.mxu0 %v1305_v27  ;;  %2152 = vmatprep.mubr.msk.f32.mxu1 %vm2326_vm0, %v2325_v2  ;;  %v867_v28 = vrot.slane %v866_v21, 4  ;;  %v873_v39 = vsel %vm787_vm2, %v863_v22, 0.0 }
 0x305   : > { %v1255_v36 = vpop.f32.mrf.mxu1  ;;  %2143 = vmatprep.subr.mxu0 %v2325_v2  ;;  %v1314_v40 = vsub.f32 %v2484_v11, %v1310_v26 }
 0x306   : > { %v1307_v41 = vsub.f32 %v2433_v1, %v1299_v32  ;;  %v1298_v43 = vmul.f32 0.05, %v1255_v36  ;;  %2144 = vmatpush3.msra.mxu0 %v1304_v31  ;;  %v1271_v1 = vsel %vm787_vm2, %v2570_v54, 0.0  ;;  %v1270_v54 = vadd.f32 %v1269_v38, %v1268_v63 }
 0x307   : > { %2146 = vmatmul.mubr.msk.f32.vlgmr.msra.gmra.mxu0 %vm460_vm1, %v443_v35  ;;  %v1272_v55 = vrot.slane %v1271_v1, 4  ;;  %v864_v31 = vmul.f32 %v2506_v44, %v2565_v51  ;;  %v1347_v44 = vrot.slane %v1314_v40, %v2479_v10 }
 0x308   : > { %v1306_v46 = vsub.f32 %v2441_v3, %v1298_v43  ;;  %2149 = vmatpush3.msra.mxu1 %v1307_v41  ;;  %v1308_v13 = vmul.f32 0.05, %v1270_v54  ;;  %v868_v41 = vadd.f32 %v867_v28, %v866_v21  ;;  %v874_v43 = vrot.slane %v873_v39, 4 }
 0x309   : > { %2150 = vmatprep.subr.mxu1 %v2325_v2  ;;  %v1273_v3 = vadd.f32 %v1272_v55, %v1271_v1  ;;  %v1285_v2 = vsel %vm787_vm2, %v2593_v4, 0.0  ;;  %v880_v49 = vsel %vm787_vm2, %v864_v31, 0.0 }
 0x30a   : > { %2151 = vmatpush3.msra.mxu1 %v1306_v46  ;;  %v1286_v62 = vrot.slane %v1285_v2, 4  ;;  %v1312_v4 = vsub.f32 %v2484_v11, %v1308_v13  ;;  %v869_v55 = vrot.slane %v868_v41, 2  ;;  %v875_v56 = vadd.f32 %v874_v43, %v873_v39 }
 0x30b   : > { %2153 = vmatmul.mubr.msk.f32.vlgmr.msra.gmra.mxu1 %vm460_vm1, %v444_v48  ;;  %v1274_v0 = vrot.slane %v1273_v3, 2  ;;  %v881_v57 = vrot.slane %v880_v49, 4 }
 0x30c   : > { %v1287_v45 = vadd.f32 %v1286_v62, %v1285_v2  ;;  %v1339_v23 = vrot.slane %v1312_v4, %v2479_v10  ;;  %v887_v2 = vsel %vm787_vm2, %v865_v50, 0.0  ;;  %v876_v47 = vrot.slane %v875_v56, 2 }
 0x30d   : > { %v1275_v5 = vadd.f32 %v1274_v0, %v1273_v3  ;;  %v870_v0 = vadd.f32 %v869_v55, %v868_v41  ;;  %v888_v38 = vrot.slane %v887_v2, 4 }
 0x30e   : > { %v1288_v12 = vrot.slane %v1287_v45, 2 }
 0x30f   : > { %v1276_v7 = vrot.slane %v1275_v5, 1  ;;  %v871_v54 = vrot.slane %v870_v0, 1 }
 0x310   : > { %v1289_v15 = vadd.f32 %v1288_v12, %v1287_v45  ;;  %v882_v45 = vadd.f32 %v881_v57, %v880_v49  ;;  %v889_v12 = vadd.f32 %v888_v38, %v887_v2 }
 0x311   : > { %v1277_v61 = vadd.f32 %v1276_v7, %v1275_v5  ;;  %v877_v7 = vadd.f32 %v876_v47, %v875_v56  ;;  %v872_v14 = vadd.f32 %v871_v54, %v870_v0 }
 0x312   : > { %v1290_v19 = vrot.slane %v1289_v15, 1  ;;  %v883_v9 = vrot.slane %v882_v45, 2  ;;  %v890_v4 = vrot.slane %v889_v12, 2 }
 0x313   : > { %v1309_v17 = vmul.f32 0.05, %v1277_v61 }
 0x314   : > { %v1291_v27 = vadd.f32 %v1290_v19, %v1289_v15  ;;  %v878_v15 = vrot.slane %v877_v7, 1  ;;  %v884_v16 = vadd.f32 %v883_v9, %v882_v45  ;;  %v1316_v19 = vmul.f32 0.05, %v872_v14 }
 0x315   : > { %v1313_v24 = vsub.f32 %v2484_v11, %v1309_v17 }
 0x316   : > { %v1311_v42 = vmul.f32 0.05, %v1291_v27  ;;  %v879_v21 = vadd.f32 %v878_v15, %v877_v7  ;;  %v885_v22 = vrot.slane %v884_v16, 1  ;;  %v1320_v27 = vsub.f32 %v2491_v37, %v1316_v19 }
 0x317   : > { %v1343_v36 = vrot.slane %v1313_v24, %v2479_v10 }
 0x318   : > { %v1315_v51 = vsub.f32 %v2484_v11, %v1311_v42  ;;  %v886_v28 = vadd.f32 %v885_v22, %v884_v16  ;;  %v1317_v39 = vmul.f32 0.05, %v879_v21 }
 0x31a   : > { %v1351_v63 = vrot.slane %v1315_v51, %v2479_v10  ;;  %v1318_v40 = vmul.f32 0.05, %v886_v28 }
 0x3bf   : > { %v1425_v29 = vpop.f32.mrf.mxu0 }
 0x3c0   : > { %v1426_v34 = vadd.f32 %v1425_v29, %v1339_v23  ;;  %v891_v23 = vadd.f32 %v890_v4, %v889_v12 }
 0x3c1   : > { %v2133_v32 = vpop.f32.mrf.mxu0 }
 0x3c2   : > { %v2035_v35 = vmul.f32 -1.442695, %v1426_v34  ;;  %v892_v29 = vrot.slane %v891_v23, 1  ;;  %v1679_v32 = vrot.slane %v1320_v27, %v2479_v10 }
 0x3c3   : > { %v1498_v46 = vpop.f32.mrf.mxu1 }
 0x3c4   : > { %2231 = vpow2.f32 %v2035_v35  ;;  %v1499_v48 = vadd.f32 %v1498_v46, %v1343_v36  ;;  %v893_v35 = vadd.f32 %v892_v29, %v891_v23  ;;  %v1321_v36 = vsub.f32 %v2491_v37, %v1317_v39 }
 0x3c5   : > { %v2140_v1 = vpop.f32.mrf.mxu1 }
 0x3c6   : > { %v2036_v53 = vmul.f32 -1.442695, %v1499_v48  ;;  %v1683_v46 = vrot.slane %v1321_v36, %v2479_v10  ;;  %v1322_v48 = vsub.f32 %v2491_v37, %v1318_v40  ;;  %v1319_v49 = vmul.f32 0.05, %v893_v35 }
 0x3c7   : > { %v1571_v3 = vpop.f32.mrf.mxu0 }
 0x3c8   : > { %2233 = vpow2.f32 %v2036_v53  ;;  %v1572_v58 = vadd.f32 %v1571_v3, %v1347_v44  ;;  %v1687_v44 = vrot.slane %v1322_v48, %v2479_v10  ;;  %v1323_v51 = vsub.f32 %v2491_v37, %v1319_v49 }
 0x3c9   : > { %v2147_v60 = vpop.f32.mrf.mxu0  ;;  %v902_v37 = vsel %vm894_vm4, %v2534_v25, 0.0 }
 0x3ca   : > { %v2037_v62 = vmul.f32 -1.442695, %v1572_v58  ;;  %v1691_v57 = vrot.slane %v1323_v51, %v2479_v10  ;;  %v903_v47 = vrot.slane %v902_v37, 4 }
 0x3cb   : > { %v1644_v59 = vpop.f32.mrf.mxu1 }
 0x3cc   : > { %2235 = vpow2.f32 %v2037_v62  ;;  %v1645_v5 = vadd.f32 %v1644_v59, %v1351_v63  ;;  %v895_v62 = vsel %vm894_vm4, %v2526_v20, 0.0  ;;  %v909_v59 = vsel %vm894_vm4, %v2539_v30, 0.0 }
 0x3cd   : > { %v2154_v11 = vpop.f32.mrf.mxu1  ;;  %v896_v63 = vrot.slane %v895_v62, 4  ;;  %v904_v38 = vadd.f32 %v903_v47, %v902_v37  ;;  %v445_v37 = vld [vmem:[%s2706_s22] sm:$0xff] }
 0x3ce   : > { %v2038_v6 = vmul.f32 -1.442695, %v1645_v5  ;;  %v910_v5 = vrot.slane %v909_v59, 4  ;;  %v916_v11 = vsel %vm894_vm4, %v2544_v33, 0.0 }
 0x3cf   : > { %v897_v0 = vadd.f32 %v896_v63, %v895_v62  ;;  %v917_v7 = vrot.slane %v916_v11, 4 }
 0x3d0   : > { %2237 = vpow2.f32 %v2038_v6  ;;  %v905_v6 = vrot.slane %v904_v38, 2  ;;  %v911_v54 = vadd.f32 %v910_v5, %v909_v59 }
 0x3d1   : > { %v2232_v13 = vpop.eup %2231  ;;  %v898_v45 = vrot.slane %v897_v0, 2  ;;  %v918_v12 = vadd.f32 %v917_v7, %v916_v11  ;;  %v446_v7 = vld [vmem:[%s2706_s22 + $0x8] sm:$0xff] }
 0x3d2   : > { %v1660_v61 = vadd.f32 1.0, %v2232_v13  ;;  %v912_v20 = vrot.slane %v911_v54, 2 }
 0x3d3   : > { %v899_v9 = vadd.f32 %v898_v45, %v897_v0  ;;  %v919_v25 = vrot.slane %v918_v12, 2 }
 0x3d4   : > { %2239 = vrcp.f32 %v1660_v61  ;;  %v906_v61 = vadd.f32 %v905_v6, %v904_v38  ;;  %v913_v16 = vadd.f32 %v912_v20, %v911_v54 }
 0x3d5   : > { %v2234_v17 = vpop.eup %2233  ;;  %v900_v13 = vrot.slane %v899_v9, 1 }
 0x3d6   : > { %v1661_v18 = vadd.f32 1.0, %v2234_v17  ;;  %v907_v15 = vrot.slane %v906_v61, 1  ;;  %v914_v17 = vrot.slane %v913_v16, 1 }
 0x3d7   : > { %v901_v14 = vadd.f32 %v900_v13, %v899_v9 }
 0x3d8   : > { %2241 = vrcp.f32 %v1661_v18  ;;  %v908_v30 = vadd.f32 %v907_v15, %v906_v61  ;;  %v920_v18 = vadd.f32 %v919_v25, %v918_v12  ;;  %v915_v33 = vadd.f32 %v914_v17, %v913_v16  ;;  %v447_v25 = vld [vmem:[%s2706_s22 + $0x10] sm:$0xff] }
 0x3d9   : > { %v2236_v24 = vpop.eup %2235  ;;  %v1324_v4 = vmul.f32 0.05, %v901_v14 }
 0x3da   : > { %v1662_v26 = vadd.f32 1.0, %v2236_v24  ;;  %v1325_v21 = vmul.f32 0.05, %v908_v30  ;;  %v921_v22 = vrot.slane %v920_v18, 1 }
 0x3db   : > { %v1328_v19 = vsub.f32 %v2517_v52, %v1324_v4 }
 0x3dc   : > { %2243 = vrcp.f32 %v1662_v26  ;;  %v1329_v24 = vsub.f32 %v2517_v52, %v1325_v21  ;;  %v1326_v26 = vmul.f32 0.05, %v915_v33  ;;  %v922_v27 = vadd.f32 %v921_v22, %v920_v18 }
 0x3dd   : > { %v2238_v34 = vpop.eup %2237  ;;  %v1719_v23 = vrot.slane %v1328_v19, %v2479_v10 }
 0x3de   : > { %v1663_v31 = vadd.f32 1.0, %v2238_v34  ;;  %v1723_v34 = vrot.slane %v1329_v24, %v2479_v10 }
 0x3e0   : > { %2245 = vrcp.f32 %v1663_v31  ;;  %v1330_v31 = vsub.f32 %v2517_v52, %v1326_v26 }
 0x3e1   : > { %v2240_v42 = vpop.eup %2239 }
 0x3e2   : > { %v1696_v41 = vmul.f32 %v2240_v42, %v1679_v32  ;;  %v1327_v32 = vmul.f32 0.05, %v922_v27 }
 0x3e4   : > { %v1700_v43 = vsel %vm787_vm2, %v1696_v41, 0.0 }
 0x3e5   : > { %v2242_v50 = vpop.eup %2241  ;;  %1701 = vadd.xlane.f32.xlu1 %v1700_v43  ;;  %v1727_v43 = vrot.slane %v1330_v31, %v2479_v10 }
 0x3e6   : > { %v1697_v1 = vmul.f32 %v2242_v50, %v1683_v46  ;;  %v1331_v46 = vsub.f32 %v2517_v52, %v1327_v32 }
 0x3e8   : > { %v1703_v53 = vsel %vm787_vm2, %v1697_v1, 0.0 }
 0x3e9   : > { %v2244_v55 = vpop.eup %2243  ;;  %1704 = vadd.xlane.f32.xlu0 %v1703_v53 }
 0x3ea   : > { %v1698_v56 = vmul.f32 %v2244_v55, %v1687_v44  ;;  %v1731_v44 = vrot.slane %v1331_v46, %v2479_v10 }
 0x3ec   : > { %v1706_v3 = vsel %vm787_vm2, %v1698_v56, 0.0 }
 0x3ed   : > { %v2246_v58 = vpop.eup %2245  ;;  %1707 = vadd.xlane.f32.xlu1 %v1706_v3 }
 0x3ee   : > { %v1699_v2 = vmul.f32 %v2246_v58, %v1691_v57 }
 0x3f0   : > { %v1709_v60 = vsel %vm787_vm2, %v1699_v2, 0.0 }
 0x3f1   : > { %1710 = vadd.xlane.f32.xlu1 %v1709_v60 }
 0x46e   : > { %v1702_v28 = vpop.xlane.xlu1 %1701 }
 0x46f   : > { %v1736_v29 = vadd.f32 %v1719_v23, %v1702_v28 }
 0x471   : > { %v1752_v39 = vand.u32 2147483647, %v1736_v29  ;;  %v1740_v45 = vmax.f32 %v1736_v29, 0.0  ;;  %v1744_v38 = vmul.f32 %v1736_v29, %v445_v37 }
 0x472   : > { %v1705_v35 = vpop.xlane.xlu0 %1704 }
 0x473   : > { %v1756_v36 = vsub.f32 0.0, %v1752_v39  ;;  %v2690_v40 = vadd.f32 %v1723_v34, %v1705_v35  ;;  %v1748_v20 = vsub.f32 %v1740_v45, %v1744_v38  ;;  %v448_v39 = vld [vmem:[%s2706_s22 + $0x18] sm:$0xff] }
 0x475   : > { %v1760_v42 = vmul.f32 1.442695, %v1756_v36  ;;  %v1753_v41 = vand.u32 2147483647, %v2690_v40  ;;  %v1741_v15 = vmax.f32 %v2690_v40, 0.0  ;;  %v1745_v16 = vmul.f32 %v2690_v40, %v446_v7 }
 0x476   : > { %v1708_v48 = vpop.xlane.xlu1 %1707 }
 0x477   : > { %2247 = vpow2.f32 %v1760_v42  ;;  %v1757_v49 = vsub.f32 0.0, %v1753_v41  ;;  %v2695_v50 = vadd.f32 %v1727_v43, %v1708_v48  ;;  %v1749_v26 = vsub.f32 %v1741_v15, %v1745_v16 }
 0x479   : > { %v1762_v1 = vmul.f32 1.442695, %v1757_v49  ;;  %v1754_v53 = vand.u32 2147483647, %v2695_v50  ;;  %v1742_v19 = vmax.f32 %v2695_v50, 0.0  ;;  %v1746_v21 = vmul.f32 %v2695_v50, %v447_v25 }
 0x47a   : > { %v1711_v51 = vpop.xlane.xlu1 %1710 }
 0x47b   : > { %2249 = vpow2.f32 %v1762_v1  ;;  %v1758_v55 = vsub.f32 0.0, %v1754_v53  ;;  %v2699_v56 = vadd.f32 %v1731_v44, %v1711_v51  ;;  %v1750_v35 = vsub.f32 %v1742_v19, %v1746_v21 }
 0x47d   : > { %v1764_v3 = vmul.f32 1.442695, %v1758_v55  ;;  %v1755_v57 = vand.u32 2147483647, %v2699_v56  ;;  %v1743_v36 = vmax.f32 %v2699_v56, 0.0  ;;  %v1747_v46 = vmul.f32 %v2699_v56, %v448_v39 }
 0x47f   : > { %2251 = vpow2.f32 %v1764_v3  ;;  %v1759_v52 = vsub.f32 0.0, %v1755_v57 }
 0x481   : > { %v1766_v58 = vmul.f32 1.442695, %v1759_v52 }
 0x483   : > { %2253 = vpow2.f32 %v1766_v58  ;;  %v1751_v58 = vsub.f32 %v1743_v36, %v1747_v46 }
 0x484   : > { %v2248_v2 = vpop.eup %2247 }
 0x485   : > { %v1768_v60 = vadd.f32 1.0, %v2248_v2  ;;  %v1771_v0 = vmul.f32 -0.5, %v2248_v2  ;;  %v1774_v54 = vand.u32 2147483647, %v2248_v2 }
 0x487   : > { %2255 = vlog2.f32 %v1768_v60  ;;  %v1772_v5 = vadd.f32 1.0, %v1771_v0  ;;  %vm1775_vm5 = vcmp.lt.f32.partialorder %v1774_v54, 0.0004427343 }
 0x488   : > { %v2250_v62 = vpop.eup %2249 }
 0x489   : > { %v1777_v63 = vadd.f32 1.0, %v2250_v62  ;;  %v1780_v11 = vmul.f32 -0.5, %v2250_v62  ;;  %v1773_v13 = vmul.f32 %v2248_v2, %v1772_v5  ;;  %v1783_v4 = vand.u32 2147483647, %v2250_v62 }
 0x48b   : > { %2257 = vlog2.f32 %v1777_v63  ;;  %v1781_v61 = vadd.f32 1.0, %v1780_v11  ;;  %vm1784_vm6 = vcmp.lt.f32.partialorder %v1783_v4, 0.0004427343  ;;  %v1841_v4 = vand.u32 127, %v455_v8 }
 0x48c   : > { %v2252_v10 = vpop.eup %2251 }
 0x48d   : > { %v1786_v47 = vadd.f32 1.0, %v2252_v10  ;;  %v1789_v14 = vmul.f32 -0.5, %v2252_v10  ;;  %v1782_v22 = vmul.f32 %v2250_v62, %v1781_v61  ;;  %v1792_v27 = vand.u32 2147483647, %v2252_v10 }
 0x48e   : > { %vm1863_vm9 = vcmp.eq.s32.totalorder %v1841_v4, 1  ;;  %vm1862_vm10 = vcmp.eq.s32.totalorder %v1841_v4, 0  ;;  %vm1864_vm11 = vcmp.eq.s32.totalorder %v1841_v4, 2  ;;  %vm1865_vm13 = vcmp.eq.s32.totalorder %v1841_v4, 3 }
 0x48f   : > { %2259 = vlog2.f32 %v1786_v47  ;;  %v1790_v23 = vadd.f32 1.0, %v1789_v14  ;;  %vm1793_vm7 = vcmp.lt.f32.partialorder %v1792_v27, 0.0004427343 }
 0x490   : > { %v2254_v59 = vpop.eup %2253 }
 0x491   : > { %v1795_v6 = vadd.f32 1.0, %v2254_v59  ;;  %v1798_v24 = vmul.f32 -0.5, %v2254_v59  ;;  %v1791_v42 = vmul.f32 %v2252_v10, %v1790_v23  ;;  %v1801_v48 = vand.u32 2147483647, %v2254_v59 }
 0x493   : > { %2261 = vlog2.f32 %v1795_v6  ;;  %v1799_v41 = vadd.f32 1.0, %v1798_v24  ;;  %vm1802_vm8 = vcmp.lt.f32.partialorder %v1801_v48, 0.0004427343 }
 0x494   : > { %v2256_v9 = vpop.eup %2255 }
 0x495   : > { %v1770_v12 = vmul.f32 0.6931472, %v2256_v9  ;;  %v1800_v3 = vmul.f32 %v2254_v59, %v1799_v41 }
 0x497   : > { %v1776_v30 = vsel %vm1775_vm5, %v1773_v13, %v1770_v12 }
 0x498   : > { %v2258_v17 = vpop.eup %2257  ;;  %v1804_v18 = vadd.f32 %v1776_v30, %v1748_v20 }
 0x499   : > { %v1779_v33 = vmul.f32 0.6931472, %v2258_v17 }
 0x49a   : > { %v1808_v28 = vsel %vm894_vm4, %v1804_v18, 0.0 }
 0x49b   : > { %v1785_v29 = vsel %vm1784_vm6, %v1782_v22, %v1779_v33  ;;  %v1809_v34 = vrot.slane %v1808_v28, 4 }
 0x49c   : > { %v2260_v31 = vpop.eup %2259  ;;  %v1805_v32 = vadd.f32 %v1785_v29, %v1749_v26 }
 0x49d   : > { %v1788_v40 = vmul.f32 0.6931472, %v2260_v31  ;;  %v1810_v43 = vadd.f32 %v1809_v34, %v1808_v28 }
 0x49e   : > { %v1815_v49 = vsel %vm894_vm4, %v1805_v32, 0.0 }
 0x49f   : > { %v1794_v50 = vsel %vm1793_vm7, %v1791_v42, %v1788_v40  ;;  %v1811_v1 = vrot.slane %v1810_v43, 2  ;;  %v1816_v53 = vrot.slane %v1815_v49, 4 }
 0x4a0   : > { %v2262_v44 = vpop.eup %2261  ;;  %v1806_v51 = vadd.f32 %v1794_v50, %v1750_v35 }
 0x4a1   : > { %v1797_v55 = vmul.f32 0.6931472, %v2262_v44  ;;  %v1812_v57 = vadd.f32 %v1811_v1, %v1810_v43  ;;  %v1817_v52 = vadd.f32 %v1816_v53, %v1815_v49 }
 0x4a2   : > { %v1822_v2 = vsel %vm894_vm4, %v1806_v51, 0.0 }
 0x4a3   : > { %v1803_v60 = vsel %vm1802_vm8, %v1800_v3, %v1797_v55  ;;  %v1813_v62 = vrot.slane %v1812_v57, 1  ;;  %v1818_v63 = vrot.slane %v1817_v52, 2  ;;  %v1823_v56 = vrot.slane %v1822_v2, 4 }
 0x4a4   : > { %v1807_v10 = vadd.f32 %v1803_v60, %v1751_v58 }
 0x4a5   : > { %v1814_v37 = vadd.f32 %v1813_v62, %v1812_v57  ;;  %v1819_v0 = vadd.f32 %v1818_v63, %v1817_v52  ;;  %v1824_v47 = vadd.f32 %v1823_v56, %v1822_v2 }
 0x4a6   : > { %v1829_v45 = vsel %vm894_vm4, %v1807_v10, 0.0 }
 0x4a7   : > { %v1836_v38 = vmul.f32 0.125, %v1814_v37  ;;  %v1820_v5 = vrot.slane %v1819_v0, 1  ;;  %v1825_v11 = vrot.slane %v1824_v47, 2  ;;  %v1830_v59 = vrot.slane %v1829_v45, 4 }
 0x4a9   : > { %1844 = vperm.xlu1 %2198, %v1836_v38   ;;  %v1821_v6 = vadd.f32 %v1820_v5, %v1819_v0  ;;  %v1826_v54 = vadd.f32 %v1825_v11, %v1824_v47  ;;  %v1831_v7 = vadd.f32 %v1830_v59, %v1829_v45 }
 0x4ab   : > { %v1837_v9 = vmul.f32 0.125, %v1821_v6  ;;  %v1827_v20 = vrot.slane %v1826_v54, 1  ;;  %v1832_v12 = vrot.slane %v1831_v7, 2 }
 0x4ad   : > { %1849 = vperm.xlu0 %2197, %v1837_v9   ;;  %v1828_v13 = vadd.f32 %v1827_v20, %v1826_v54  ;;  %v1833_v61 = vadd.f32 %v1832_v12, %v1831_v7 }
 0x4af   : > { %v1838_v25 = vmul.f32 0.125, %v1828_v13  ;;  %v1834_v14 = vrot.slane %v1833_v61, 1 }
 0x4b1   : > { %1854 = vperm.xlu1 %2198, %v1838_v25   ;;  %v1835_v15 = vadd.f32 %v1834_v14, %v1833_v61 }
 0x4b3   : > { %v1839_v16 = vmul.f32 0.125, %v1835_v15 }
 0x4b5   : > { %1859 = vperm.xlu1 %2198, %v1839_v16  }
 0x524   : > { %v1845_v30 = vpop.permute.xlu1 %1844 }
 0x525   : > { %v1866_v19 = vsel %vm1862_vm10, %v1845_v30, 0.0 }
 0x526   : > { %v1871_v23 = vsel %vm1870_vm12, %v1866_v19, 0.0 }
 0x528   : > { %v1850_v17 = vpop.permute.xlu0 %1849 }
 0x529   : > { %v1867_v18 = vsel %vm1863_vm9, %v1850_v17, 0.0 }
 0x52a   : > { %v1872_v21 = vsel %vm1870_vm12, %v1867_v18, 0.0 }
 0x52b   : > { %v1873_v26 = vadd.f32 %v1872_v21, %v1871_v23 }
 0x52c   : > { %v1855_v33 = vpop.permute.xlu1 %1854 }
 0x52d   : > { %v1868_v22 = vsel %vm1864_vm11, %v1855_v33, 0.0 }
 0x52e   : > { %v1874_v24 = vsel %vm1870_vm12, %v1868_v22, 0.0 }
 0x52f   : > { %v1875_v8 = vadd.f32 %v1874_v24, %v1873_v26 }
 0x530   : > { %v1860_v27 = vpop.permute.xlu1 %1859 }
 0x531   : > { %v1869_v28 = vsel %vm1865_vm13, %v1860_v27, 0.0 }
 0x532   : > { %v1876_v29 = vsel %vm1870_vm12, %v1869_v28, 0.0 }
 0x533   : > { %v1877_v39 = vadd.f32 %v1876_v29, %v1875_v8 }
 0x535   : > { %1879 = vst.msk [vmem:[%s393_s25] sm:$0x1] %vm1878_vm14, %v1877_v39 }
 0x536   : > { %2276 = shalt.err (!%p2273_p3)
}
 0x537   : > { %s2277_s18 = scalar_lea.hbm %s1891_s30, 16  ;;  %s2281_s23 = scalar_lea.hbm %s2766_s9, 32 }
 0x538   : > { %p2278_p4 = scmp.ne.s32.totalorder %s1891_s30, %s2277_s18  ;;  %p2282_p9 = scmp.lt.s32.totalorder %s1891_s30, %s2766_s9 }
 0x539   : > { %p2283_p10 = scmp.lt.s32.totalorder %s2281_s23, %s2277_s18 }
 0x53a   : > { %p2279_p7 = pnand %p2278_p4, %p2420_p5 }
 0x53b   : > { %p2284_p11 = por %p2283_p10, %p2282_p9 }
 0x53c   : > { %p2280_p8 = pneg %p2279_p7 }
 0x53e   : > { %p2285_p12 = pnand %p2284_p11, %p2280_p8 }
 0x540   : > { %2288 = shalt.err (!%p2285_p12)
}
 0x541   : > { %2155 = dma.vmem_to_hbm [thread:$0]  (%p2420_p5), %s1894_s26, 16, %s1891_s30, %s1881_s24  }
 0x542 PF: > { %p2161_p13 = scmp.ge.s32.totalorder %s2323_s14, 2  ;;  %s1905_s29 = sand.u32 1, %s2311_s11  }
 0x543   : > { %s1906_s10 = scalar_lea.sflag [#allocation4], %s1905_s29 }
 0x544   : > { %p2158_p0 = pnand %p2161_p13, %p2424_p6 }
 0x546   : > { %p2159_p1 = pneg %p2158_p0 }
 0x548   : > { %2306 = dma.done.wait (%p2159_p1), %s1906_s10, 16  }
 0x549   : > { %2308 = vsyncadd (%p2159_p1), %s1906_s10, 4294967280  ;;  %p21_p2 = scmp.ge.s32.totalorder %s2407_s16, 4   ;;  %s2769_s11 = smov %s2315_s12 }
 0x54a   : > { %s2770_s12 = smov %s2319_s13  ;;  %s2771_s13 = smov %s2418_s19 }
 0x54b   : > { %s2772_s14 = smov %s2407_s16  ;;  %23 = sbr.rel (!%p21_p2) target bundleno = 6 (0x6), region = 103 }
 0x550   :  { %1910 = vsyncpa [#allocation4], 1 }
 0x551   :  { %1912 = vsyncpa [#allocation4 + $0x1], 1 }

</bundles_post_ra>
